<compile_context>
chip_gen: v7x
topology: tpu7x:2x2x1
jax: 0.10.0
libtpu: 0.0.40
codegen_flags: <defaults>
</compile_context>

<pallas_src>
import functools

import jax
import jax.numpy as jnp
from jax import lax
from jax.experimental import pallas as pl
from jax.experimental.pallas import tpu as pltpu

LANE = 128
SUB = 8
MAX_TILE_ROWS = 4096   # v7x-safe cap: 2 MiB f32 per input block, ~8 MiB double-buffered
CHUNK_ROWS = 512       # inner-loop chunk: bounds live f32 intermediates to ~1.5 MiB


def _round_up(x, m):
    return ((x + m - 1) // m) * m


def _num_tensorcores():
    """Best-effort TensorCore count (2 on megacore chips such as v7x, else 1)."""
    try:
        info = pltpu.get_tpu_info()
        for name in ("num_cores", "core_count", "num_tensorcores", "tensorcore_count"):
            v = getattr(info, name, None)
            if isinstance(v, int) and v > 0:
                return v
    except Exception:
        pass
    try:
        v = getattr(jax.devices()[0], "num_cores", None)
        if isinstance(v, int) and v > 0:
            return v
    except Exception:
        pass
    return 1


def _focal_loss_kernel(x_ref, t_ref, out_ref, *, gamma, gamma_int, alpha,
                       hard_targets, tile_rows, chunk_rows, rows_total,
                       tiles_per_core, needs_mask):
    c = pl.program_id(0)
    i = pl.program_id(1)
    # Global row of this logical tile's origin.  Grid-overrun steps (logical
    # tile index past the real tile count) have tile_row0 >= rows_total and are
    # therefore fully masked below.
    tile_row0 = (c * tiles_per_core + i) * tile_rows

    @pl.when(i == 0)
    def _():
        out_ref[...] = jnp.zeros_like(out_ref)

    def chunk_sum(r0, cr):
        """Focal loss for rows [r0, r0+cr) of this tile, reduced to (8, LANE)."""
        p = x_ref[pl.ds(r0, cr), :].astype(jnp.float32)
        t = t_ref[pl.ds(r0, cr), :].astype(jnp.float32)

        if needs_mask:
            rid = tile_row0 + r0 + lax.broadcasted_iota(jnp.int32, (cr, 1), 0)
            valid = rid < rows_total
            # Benign values (p = t = 1 -> focal == 0 exactly) so invalid rows
            # contribute zero and never feed NaN/Inf into log/exp.
            p = jnp.where(valid, p, 1.0)
            t = jnp.where(valid, t, 1.0)

        if hard_targets:
            # Single log per element (exact for hard {0,1} targets except when
            # PyTorch's -100 log clamp would fire, i.e. p_sel < ~4e-44).
            p_sel = t * p + (1.0 - t) * (1.0 - p)
            ce = -jnp.maximum(jnp.log(p_sel), -100.0)
            p_t = p_sel
        else:
            # Exact PyTorch binary_cross_entropy path (supports soft targets).
            log_p = jnp.maximum(jnp.log(p), -100.0)
            log_1mp = jnp.maximum(jnp.log(1.0 - p), -100.0)
            ce = -(t * log_p + (1.0 - t) * log_1mp)
            p_t = jnp.exp(-ce)

        w = 1.0 - p_t
        if gamma_int is not None:
            focal = ce
            for _ in range(gamma_int):      # integer gamma: pure VPU multiplies
                focal = focal * w
        else:
            focal = (w ** gamma) * ce
        if alpha is not None:
            focal = (alpha * t + (1.0 - alpha) * (1.0 - t)) * focal

        # Reduce (cr, LANE) -> (8, LANE) with vreg-aligned adds, tree-summed to
        # avoid one long serial dependency chain through a single accumulator.
        part = jnp.zeros((SUB, LANE), jnp.float32)
        n8 = cr // SUB
        if n8:
            parts = [focal[r * SUB:(r + 1) * SUB, :] for r in range(n8)]
            while len(parts) > 1:
                nxt = [parts[a] + parts[a + 1] for a in range(0, len(parts) - 1, 2)]
                if len(parts) % 2:
                    nxt.append(parts[-1])
                parts = nxt
            part = part + parts[0]
        if cr != n8 * SUB:                  # ragged (<8-row) tail, rare
            t_sum = jnp.sum(focal[n8 * SUB:], axis=0, keepdims=True)   # (1, LANE)
            row0 = lax.broadcasted_iota(jnp.int32, (SUB, 1), 0) == 0
            part = part + jnp.where(row0, t_sum, 0.0)
        return part

    n_full = tile_rows // chunk_rows
    tail_rows = tile_rows - n_full * chunk_rows

    acc = jnp.zeros((SUB, LANE), jnp.float32)
    if n_full:
        def body(ci, a):
            r0 = pl.multiple_of(ci * chunk_rows, chunk_rows)
            return a + chunk_sum(r0, chunk_rows)
        acc = lax.fori_loop(0, n_full, body, acc)
    if tail_rows:
        acc = acc + chunk_sum(n_full * chunk_rows, tail_rows)

    # Accumulate directly into the resident output block (no scratch buffer).
    out_ref[0] = out_ref[0] + acc


def focal_loss(inp, target, *, gamma=2, alpha=None, reduction="mean",
               tile_rows=MAX_TILE_ROWS, assume_hard_targets=False):
    """Pallas TPU implementation of FocalLoss.forward for 'mean'/'sum'."""
    assert inp.shape == target.shape
    n_elem = int(inp.size)
    assert n_elem > 0

    x_flat = inp.reshape(-1)
    t_flat = target.reshape(-1)

    # Lane-dense (rows, 128) slab.  Zero-copy whenever n_elem % 128 == 0 (the
    # common image-tensor case); otherwise pad with <=127 benign elements
    # (p = t = 1 -> exactly zero focal contribution).
    # TODO(synk): the %128-remainder path still materializes one padded copy of
    # the inputs; a manual-DMA kernel (memory_space=pl.ANY) would avoid it.
    if n_elem % LANE:
        pad = _round_up(n_elem, LANE) - n_elem
        x_flat = jnp.concatenate([x_flat, jnp.ones((pad,), x_flat.dtype)])
        t_flat = jnp.concatenate([t_flat, jnp.ones((pad,), t_flat.dtype)])
    rows = x_flat.size // LANE
    x2d = x_flat.reshape(rows, LANE)
    t2d = t_flat.reshape(rows, LANE)

    # Tile selection: biggest streaming tile up to the v7x-safe cap.
    tile_rows = max(SUB, min(int(tile_rows), MAX_TILE_ROWS))
    tile_rows = _round_up(tile_rows, SUB)
    if rows <= tile_rows:
        tile_rows = rows                 # single full-extent block, no masking
    total_tiles = pl.cdiv(rows, tile_rows)

    # Megacore split only where there really are 2 TensorCores (v7x); on
    # v5e/v6e the core axis stays size 1 (it would just be a serial loop).
    num_cores = 2 if (_num_tensorcores() >= 2 and total_tiles >= 2) else 1
    tiles_per_core = pl.cdiv(total_tiles, num_cores)
    # Partial last tile / duplicated grid-overrun tiles are handled by
    # in-kernel row masking -- no padded copies of the inputs.
    needs_mask = (num_cores * tiles_per_core * tile_rows) != rows

    # Static specialisation of gamma (gamma is a Python constant).
    gamma_int = None
    if isinstance(gamma, int) and gamma >= 0:
        gamma_int = gamma
    elif isinstance(gamma, float) and gamma >= 0 and float(gamma).is_integer():
        gamma_int = int(gamma)

    # Single-log fast path: auto for bool/int targets, opt-in for float {0,1}.
    hard_targets = bool(assume_hard_targets) or jnp.issubdtype(
        target.dtype, jnp.bool_) or jnp.issubdtype(target.dtype, jnp.integer)

    kernel = functools.partial(
        _focal_loss_kernel,
        gamma=gamma, gamma_int=gamma_int, alpha=alpha,
        hard_targets=hard_targets, tile_rows=tile_rows, chunk_rows=CHUNK_ROWS,
        rows_total=rows, tiles_per_core=tiles_per_core, needs_mask=needs_mask)

    def in_map(c, i):
        tile = c * tiles_per_core + i
        # Clamp grid-overrun steps onto the last real tile; those steps are
        # fully masked in-kernel, so the re-read data contributes zero.
        return (jnp.minimum(tile, total_tiles - 1), 0)

    partials = pl.pallas_call(
        kernel,
        out_shape=jax.ShapeDtypeStruct((num_cores, SUB, LANE), jnp.float32),
        grid_spec=pltpu.PrefetchScalarGridSpec(
            num_scalar_prefetch=0,
            grid=(num_cores, tiles_per_core),
            in_specs=[
                pl.BlockSpec((tile_rows, LANE), in_map),
                pl.BlockSpec((tile_rows, LANE), in_map),
            ],
            out_specs=pl.BlockSpec((1, SUB, LANE), lambda c, i: (c, 0, 0)),
        ),
        compiler_params=pltpu.CompilerParams(
            dimension_semantics=("parallel", "arbitrary")),
    )(x2d, t2d)

    # Plain f32 accumulation per lane; tiny drift possible vs. PyTorch for
    # extremely large tensors, acceptable for a loss value.
    total = jnp.sum(partials)

    if reduction == "mean":
        return total / n_elem
    elif reduction == "sum":
        return total
    else:
        # TODO(synk): reduction='none' (elementwise map output) is not lowered
        # here; only the reduced 'mean'/'sum' paths are implemented.
        raise NotImplementedError("reduction='none' not implemented")


def focal_loss_ref(inp, target, gamma=2, alpha=None):
    p = inp.astype(jnp.float32)
    t = target.astype(jnp.float32)
    ce = -(t * jnp.maximum(jnp.log(p), -100.0)
           + (1.0 - t) * jnp.maximum(jnp.log(1.0 - p), -100.0))
    p_t = jnp.exp(-ce)
    fl = (1.0 - p_t) ** gamma * ce
    if alpha is not None:
        fl = (alpha * t + (1.0 - alpha) * (1.0 - t)) * fl
    return jnp.mean(fl)


if __name__ == "__main__":
    key = jax.random.PRNGKey(0)
    k1, k2 = jax.random.split(key)
    # NCHW-shaped probabilities and binary targets (as in the PyTorch module).
    shape = (2, 4, 16, 16)
    inp = jax.random.uniform(k1, shape, jnp.float32,
                             minval=1e-4, maxval=1.0 - 1e-4)
    target = (jax.random.uniform(k2, shape, jnp.float32) > 0.5).astype(jnp.float32)

    # Exact path (default): gamma=2, no alpha, 'mean' reduction.
    out = focal_loss(inp, target, gamma=2, alpha=None, reduction="mean")
    out = jax.block_until_ready(out)
    ref = focal_loss_ref(inp, target, gamma=2, alpha=None)
    assert jnp.allclose(out, ref, rtol=1e-5, atol=1e-6), (out, ref)

    # Alpha weighting + single-log fast path (valid for hard {0,1} targets).
    out2 = focal_loss(inp, target, gamma=2, alpha=0.25, reduction="mean",
                      assume_hard_targets=True)
    out2 = jax.block_until_ready(out2)
    ref2 = focal_loss_ref(inp, target, gamma=2, alpha=0.25)
    assert jnp.allclose(out2, ref2, rtol=1e-4, atol=1e-6), (out2, ref2)

    # 'sum' reduction, non-integer gamma fallback.
    out3 = focal_loss(inp, target, gamma=1.5, alpha=None, reduction="sum")
    out3 = jax.block_until_ready(out3)
    ref3 = focal_loss_ref(inp, target, gamma=1.5, alpha=None) * inp.size
    assert jnp.allclose(out3, ref3, rtol=1e-4, atol=1e-4), (out3, ref3)

    # Multi-tile grid + cross-step accumulation into the resident out block.
    out4 = focal_loss(inp, target, gamma=2, alpha=None, reduction="mean",
                      tile_rows=8)
    out4 = jax.block_until_ready(out4)
    assert jnp.allclose(out4, ref, rtol=1e-5, atol=1e-6), (out4, ref)

    print("KERNEL_OK")
</pallas_src>

<mosaic_0001>
module attributes {stable_mosaic.version = 11 : i64} {
  func.func @_focal_loss_kernel(%arg0: i32, %arg1: i32, %arg2: memref<16x128xf32, #tpu.memory_space<vmem>>, %arg3: memref<16x128xf32, #tpu.memory_space<vmem>>, %arg4: memref<1x8x128xf32, #tpu.memory_space<vmem>>) attributes {dimension_semantics = [#tpu.dimension_semantics<parallel>, #tpu.dimension_semantics<arbitrary>], iteration_bounds = array<i64: 1, 1>, scalar_prefetch = 0 : i64, scratch_operands = 0 : i64, tpu.core_type = #tpu.core_type<tc>, window_params = [{transform_indices = @transform_0, window_bounds = array<i64: 16, 128>}, {transform_indices = @transform_1, window_bounds = array<i64: 16, 128>}, {transform_indices = @transform_2, window_bounds = array<i64: 1, 8, 128>}]} {
    %c0_i32 = arith.constant 0 : i32
    %0 = arith.cmpi eq, %arg1, %c0_i32 : i32
    %1 = arith.extui %0 : i1 to i32
    %c0_i32_0 = arith.constant 0 : i32
    %2 = arith.cmpi ne, %1, %c0_i32_0 : i32
    scf.if %2 {
      %cst_18 = arith.constant 0.000000e+00 : f32
      %40 = vector.broadcast %cst_18 : f32 to vector<1x8x128xf32>
      %c0_19 = arith.constant 0 : index
      %c0_20 = arith.constant 0 : index
      %c0_21 = arith.constant 0 : index
      %41 = vector.load %arg4[%c0_19, %c0_20, %c0_21] : memref<1x8x128xf32, #tpu.memory_space<vmem>>, vector<1x8x128xf32>
      tpu.vector_store %arg4[%c0_19, %c0_20, %c0_21], %40 {strides = array<i32>} : memref<1x8x128xf32, #tpu.memory_space<vmem>>, vector<1x8x128xf32>,
    } else {
    }
    %cst = arith.constant 0.000000e+00 : f32
    %3 = vector.broadcast %cst : f32 to vector<8x128xf32>
    %c0 = arith.constant 0 : index
    %c0_1 = arith.constant 0 : index
    %4 = vector.load %arg2[%c0, %c0_1] : memref<16x128xf32, #tpu.memory_space<vmem>>, vector<16x128xf32>
    %c0_2 = arith.constant 0 : index
    %c0_3 = arith.constant 0 : index
    %5 = vector.load %arg3[%c0_2, %c0_3] : memref<16x128xf32, #tpu.memory_space<vmem>>, vector<16x128xf32>
    %6 = math.log %4 : vector<16x128xf32>
    %cst_4 = arith.constant -1.000000e+02 : f32
    %7 = vector.broadcast %cst_4 : f32 to vector<16x128xf32>
    %8 = arith.maximumf %6, %7 : vector<16x128xf32>
    %cst_5 = arith.constant 1.000000e+00 : f32
    %9 = vector.broadcast %cst_5 : f32 to vector<16x128xf32>
    %10 = arith.subf %9, %4 : vector<16x128xf32>
    %11 = math.log %10 : vector<16x128xf32>
    %cst_6 = arith.constant -1.000000e+02 : f32
    %12 = vector.broadcast %cst_6 : f32 to vector<16x128xf32>
    %13 = arith.maximumf %11, %12 : vector<16x128xf32>
    %14 = arith.mulf %5, %8 : vector<16x128xf32>
    %cst_7 = arith.constant 1.000000e+00 : f32
    %15 = vector.broadcast %cst_7 : f32 to vector<16x128xf32>
    %16 = arith.subf %15, %5 : vector<16x128xf32>
    %17 = arith.mulf %16, %13 : vector<16x128xf32>
    %18 = arith.addf %14, %17 : vector<16x128xf32>
    %cst_8 = arith.constant 0.000000e+00 : f32
    %19 = vector.broadcast %cst_8 : f32 to vector<16x128xf32>
    %20 = arith.subf %19, %18 : vector<16x128xf32>
    %cst_9 = arith.constant 0.000000e+00 : f32
    %21 = vector.broadcast %cst_9 : f32 to vector<16x128xf32>
    %22 = arith.subf %21, %20 : vector<16x128xf32>
    %23 = math.exp %22 : vector<16x128xf32>
    %cst_10 = arith.constant 1.000000e+00 : f32
    %24 = vector.broadcast %cst_10 : f32 to vector<16x128xf32>
    %25 = arith.subf %24, %23 : vector<16x128xf32>
    %26 = arith.mulf %20, %25 : vector<16x128xf32>
    %27 = arith.mulf %26, %25 : vector<16x128xf32>
    %cst_11 = arith.constant 0.000000e+00 : f32
    %28 = vector.broadcast %cst_11 : f32 to vector<8x128xf32>
    %29 = vector.extract_strided_slice %27 {offsets = [0, 0], sizes = [8, 128], strides = [1, 1]} : vector<16x128xf32> to vector<8x128xf32>
    %30 = vector.extract_strided_slice %27 {offsets = [8, 0], sizes = [8, 128], strides = [1, 1]} : vector<16x128xf32> to vector<8x128xf32>
    %31 = arith.addf %29, %30 : vector<8x128xf32>
    %32 = arith.addf %28, %31 : vector<8x128xf32>
    %33 = arith.addf %3, %32 : vector<8x128xf32>
    %c0_12 = arith.constant 0 : index
    %c0_13 = arith.constant 0 : index
    %c0_14 = arith.constant 0 : index
    %34 = vector.load %arg4[%c0_12, %c0_13, %c0_14] : memref<1x8x128xf32, #tpu.memory_space<vmem>>, vector<1x8x128xf32>
    %35 = vector.shape_cast %34 : vector<1x8x128xf32> to vector<8x128xf32>
    %36 = arith.addf %35, %33 : vector<8x128xf32>
    %c0_15 = arith.constant 0 : index
    %c0_16 = arith.constant 0 : index
    %c0_17 = arith.constant 0 : index
    %37 = vector.load %arg4[%c0_15, %c0_16, %c0_17] : memref<1x8x128xf32, #tpu.memory_space<vmem>>, vector<1x8x128xf32>
    %38 = vector.shape_cast %37 : vector<1x8x128xf32> to vector<8x128xf32>
    %39 = vector.shape_cast %36 : vector<8x128xf32> to vector<1x8x128xf32>
    tpu.vector_store %arg4[%c0_15, %c0_16, %c0_17], %39 {strides = array<i32>} : memref<1x8x128xf32, #tpu.memory_space<vmem>>, vector<1x8x128xf32>,
    return
  }
  func.func @transform_0(%arg0: i32, %arg1: i32) -> (i32, i32) {
    %c1_i32 = arith.constant 1 : i32
    %0 = arith.muli %arg0, %c1_i32 : i32
    %1 = arith.addi %0, %arg1 : i32
    %c0_i32 = arith.constant 0 : i32
    %2 = arith.minsi %1, %c0_i32 : i32
    %c0_i32_0 = arith.constant 0 : i32
    %c0_i32_1 = arith.constant 0 : i32
    return %2, %c0_i32_0 : i32, i32
  }
  func.func @transform_1(%arg0: i32, %arg1: i32) -> (i32, i32) {
    %c1_i32 = arith.constant 1 : i32
    %0 = arith.muli %arg0, %c1_i32 : i32
    %1 = arith.addi %0, %arg1 : i32
    %c0_i32 = arith.constant 0 : i32
    %2 = arith.minsi %1, %c0_i32 : i32
    %c0_i32_0 = arith.constant 0 : i32
    %c0_i32_1 = arith.constant 0 : i32
    return %2, %c0_i32_0 : i32, i32
  }
  func.func @transform_2(%arg0: i32, %arg1: i32) -> (i32, i32, i32) {
    %c0_i32 = arith.constant 0 : i32
    %c0_i32_0 = arith.constant 0 : i32
    %c0_i32_1 = arith.constant 0 : i32
    return %arg0, %c0_i32, %c0_i32_0 : i32, i32, i32
  }
}

</mosaic_0001>

<bundles_post_ra>
// kernel: tpu_custom_call.1
= control target key start
LH: loop header
LB: loop body
LE: loop exit
PB: predicated region body
PF: predicated region fallthrough
CT: control target
= control target key end

     0   :  { %7 = vsyncpa [#allocation3], 0  ;;  %s277_s0 = inlined_call_operand.hbm [shape: f32[16,128], index: 0, kind: input, shape index: {}]   ;;  %s278_s1 = inlined_call_operand.hbm [shape: f32[16,128], index: 1, kind: input, shape index: {}]   ;;  %s279_s2 = inlined_call_operand.hbm [shape: f32[1,8,128], index: 2, kind: output, shape index: {}]  }
   0x1   :  { %8 = vsyncpa [#allocation6], 0 }
   0x2   :  { %9 = vsyncpa [#allocation4], 0  ;;  %s221_s9 = smov [#allocation2]   ;;  %s149_s13 = scalar_lea.hbm %s277_s0, 256 }
   0x3   :  { %s21_s10 = sshll.u32 %s221_s9, 4  ;;  %p150_p0 = scmp.ne.s32.totalorder %s277_s0, %s149_s13  ;;  %s22_s10 = int_to_ptr.vmem [resolvable:$true] %s21_s10 }
   0x4   :  { %p153_p1 = scmp.lt.u32.totalorder %s149_s13, %s277_s0 }
   0x6   :  { %p155_p2 = pnand %p153_p1, %p150_p0 }
   0x8   :  { %158 = shalt.err (!%p155_p2)
}
   0x9   :  { %s159_s18 = scalar_lea.vmem %s22_s10, 256  ;;  %p164_p4 = scmp.lt.s32.totalorder %s22_s10, %s22_s10 }
   0xa   :  { %p160_p3 = scmp.ne.s32.totalorder %s22_s10, %s159_s18  ;;  %p165_p5 = scmp.lt.s32.totalorder %s159_s18, %s159_s18 }
   0xc   :  { %p166_p6 = por %p165_p5, %p164_p4 }
   0xe   :  { %p167_p7 = pnand %p166_p6, %p160_p3 }
  0x10   :  { %170 = shalt.err (!%p167_p7)
}
  0x11   :  { %s222_s19 = smov 128   ;;  %s223_s20 = smov 8  }
  0x12   :  { %27 = dma.hbm_to_vmem [thread:$0]  %s277_s0, 256, %s22_s10, [#allocation3], %s222_s19, %s222_s19, %s223_s20  }
  0x13   :  { %s224_s23 = smov [#allocation5]   ;;  %s171_s27 = scalar_lea.hbm %s278_s1, 256 }
  0x14   :  { %s39_s24 = sshll.u32 %s224_s23, 4  ;;  %p172_p8 = scmp.ne.s32.totalorder %s278_s1, %s171_s27  ;;  %s40_s24 = int_to_ptr.vmem [resolvable:$true] %s39_s24 }
  0x15   :  { %p175_p9 = scmp.lt.u32.totalorder %s171_s27, %s278_s1 }
  0x17   :  { %p177_p10 = pnand %p175_p9, %p172_p8 }
  0x19   :  { %180 = shalt.err (!%p177_p10)
}
  0x1a   :  { %s181_s4 = scalar_lea.vmem %s40_s24, 256  ;;  %p186_p12 = scmp.lt.s32.totalorder %s40_s24, %s40_s24 }
  0x1b   :  { %p182_p11 = scmp.ne.s32.totalorder %s40_s24, %s181_s4  ;;  %p187_p13 = scmp.lt.s32.totalorder %s181_s4, %s181_s4 }
  0x1d   :  { %p188_p0 = por %p187_p13, %p186_p12 }
  0x1f   :  { %p189_p1 = pnand %p188_p0, %p182_p11 }
  0x21   :  { %192 = shalt.err (!%p189_p1)
}
  0x22   :  { %45 = dma.hbm_to_vmem [thread:$0]  %s278_s1, 256, %s40_s24, [#allocation6], %s222_s19, %s222_s19, %s223_s20  }
  0x23   :  { %215 = dma.done.wait [#allocation3], 256  }
  0x24   :  { %216 = vsyncadd [#allocation3], 4294967040 }
  0x25   :  { %217 = dma.done.wait [#allocation6], 256  }
  0x26   :  { %218 = vsyncadd [#allocation6], 4294967040  ;;  %v65_v0 = vld [vmem:[#allocation2] sm:$0xff]  ;;  %v66_v1 = vld [vmem:[#allocation2 + $0x8] sm:$0xff]  ;;  %s225_s1 = smov [#allocation7]  }
  0x27   :  { %137 = vlog2.f32 %v65_v0  ;;  %v75_v2 = vsub.f32 1.0, %v65_v0  ;;  %v76_v3 = vsub.f32 1.0, %v66_v1  ;;  %v67_v5 = vld [vmem:[#allocation5] sm:$0xff]  ;;  %v68_v7 = vld [vmem:[#allocation5 + $0x8] sm:$0xff]  ;;  %s117_s6 = sshll.u32 %s225_s1, 4  ;;  %s118_s6 = int_to_ptr.vmem [resolvable:$true] %s117_s6 }
  0x28   :  { %139 = vlog2.f32 %v66_v1  ;;  %v85_v14 = vsub.f32 1.0, %v67_v5  ;;  %v86_v17 = vsub.f32 1.0, %v68_v7  ;;  %s193_s7 = scalar_lea.vmem %s118_s6, 128  ;;  %p198_p3 = scmp.lt.s32.totalorder %s118_s6, %s118_s6 }
  0x29   :  { %141 = vlog2.f32 %v75_v2  ;;  %p194_p2 = scmp.ne.s32.totalorder %s118_s6, %s193_s7  ;;  %p199_p4 = scmp.lt.s32.totalorder %s193_s7, %s193_s7 }
  0x2a   :  { %143 = vlog2.f32 %v76_v3 }
  0x2b   :  { %p200_p5 = por %p199_p4, %p198_p3 }
  0x2d   :  { %p201_p6 = pnand %p200_p5, %p194_p2 }
  0x31   :  { %v138_v4 = vpop.eup %137 }
  0x32   :  { %v140_v6 = vpop.eup %139  ;;  %v70_v8 = vmul.f32 0.6931472, %v138_v4 }
  0x33   :  { %v142_v9 = vpop.eup %141  ;;  %v72_v10 = vmul.f32 0.6931472, %v140_v6 }
  0x34   :  { %v144_v11 = vpop.eup %143  ;;  %v73_v12 = vmax.f32 %v70_v8, -100.0  ;;  %v78_v13 = vmul.f32 0.6931472, %v142_v9 }
  0x35   :  { %v74_v15 = vmax.f32 %v72_v10, -100.0  ;;  %v80_v16 = vmul.f32 0.6931472, %v144_v11 }
  0x36   :  { %v81_v18 = vmax.f32 %v78_v13, -100.0  ;;  %v83_v19 = vmul.f32 %v73_v12, %v67_v5 }
  0x37   :  { %v82_v20 = vmax.f32 %v80_v16, -100.0  ;;  %v84_v21 = vmul.f32 %v74_v15, %v68_v7 }
  0x38   :  { %v87_v22 = vmul.f32 %v85_v14, %v81_v18 }
  0x39   :  { %v88_v23 = vmul.f32 %v86_v17, %v82_v20 }
  0x3a   :  { %v89_v24 = vadd.f32 %v87_v22, %v83_v19 }
  0x3b   :  { %v90_v25 = vadd.f32 %v88_v23, %v84_v21 }
  0x3c   :  { %v91_v26 = vsub.f32 0.0, %v89_v24 }
  0x3d   :  { %v92_v27 = vsub.f32 0.0, %v90_v25 }
  0x3e   :  { %v93_v28 = vsub.f32 0.0, %v91_v26 }
  0x3f   :  { %v94_v29 = vsub.f32 0.0, %v92_v27 }
  0x40   :  { %v95_v30 = vmul.f32 1.442695, %v93_v28 }
  0x41   :  { %v97_v31 = vmul.f32 1.442695, %v94_v29 }
  0x42   :  { %145 = vpow2.f32 %v95_v30 }
  0x43   :  { %147 = vpow2.f32 %v97_v31 }
  0x4c   :  { %v146_v32 = vpop.eup %145 }
  0x4d   :  { %v148_v33 = vpop.eup %147  ;;  %v99_v34 = vsub.f32 1.0, %v146_v32 }
  0x4e   :  { %v100_v35 = vsub.f32 1.0, %v148_v33 }
  0x4f   :  { %v101_v36 = vmul.f32 %v99_v34, %v91_v26 }
  0x50   :  { %v102_v37 = vmul.f32 %v100_v35, %v92_v27 }
  0x51   :  { %v103_v38 = vmul.f32 %v101_v36, %v99_v34 }
  0x52   :  { %v104_v39 = vmul.f32 %v102_v37, %v100_v35 }
  0x54   :  { %v105_v40 = vadd.f32 %v104_v39, %v103_v38 }
  0x56   :  { %110 = vst [vmem:[#allocation7] sm:$0xff] %v105_v40 }
  0x57   :  { %204 = shalt.err (!%p201_p6)
}
  0x58   :  { %s205_s10 = scalar_lea.hbm %s279_s2, 128 }
  0x59   :  { %p206_p7 = scmp.ne.s32.totalorder %s279_s2, %s205_s10  ;;  %p209_p8 = scmp.lt.u32.totalorder %s205_s10, %s279_s2 }
  0x5b   :  { %p211_p9 = pnand %p209_p8, %p206_p7 }
  0x5d   :  { %214 = shalt.err (!%p211_p9)
}
  0x5e   :  { %120 = dma.vmem_to_hbm [thread:$0]  %s118_s6, 128, %s279_s2, [#allocation4]  }
  0x5f   :  { %219 = dma.done.wait [#allocation4], 128  }
  0x60   :  { %220 = vsyncadd [#allocation4], 4294967168 }
  0x61   :  { %124 = vsyncpa [#allocation3], 1 }
  0x62   :  { %125 = vsyncpa [#allocation6], 1 }
  0x63   :  { %126 = vsyncpa [#allocation4], 1 }

</bundles_post_ra>
